<compile_context>
chip_gen: v7x
topology: tpu7x:2x2x1
jax: 0.10.0
libtpu: 0.0.40
codegen_flags: <defaults>
</compile_context>

<pallas_src>
import functools
import math

import jax
import jax.numpy as jnp
from jax import lax
from jax.experimental import pallas as pl
from jax.experimental.pallas import tpu as pltpu


def _round_up(a, m):
    return ((a + m - 1) // m) * m


def _label_smoothing_kernel(x_ref, t_ref, o_ref, *, padding_idx, confidence,
                            smooth_val, entropy_per_row, valid_cols):
    """One grid step: (row_tile, v_pad) tile of log-probs -> (8,128) partial."""
    tm, vp = x_ref.shape            # static Python ints (block shape)
    x = x_ref[...]                  # (TM, Vp) input dtype (bf16 or f32)
    t = t_ref[...]                  # (TM, 1) int32 targets (tail padded w/ padding_idx)

    row_valid = t != padding_idx    # padding rows AND ragged-tail garbage rows -> False
    col = lax.broadcasted_iota(jnp.int32, (tm, vp), 1)

    # Mask BEFORE any sum: invalid rows and (if V % 128 != 0) garbage lanes.
    if valid_cols != vp:
        mask = jnp.logical_and(row_valid, col < valid_cols)
    else:
        mask = row_valid
    xm = jnp.where(mask, x.astype(jnp.float32), jnp.float32(0.0))   # (TM, Vp) f32

    def row_block_sum(a):
        # (TM, Vp) -> (8, Vp): layout-native split of the sublane axis, then a
        # leading-axis reduce == pure vreg adds (no cross-lane XLU work).
        return jnp.sum(a.reshape(tm // 8, 8, vp), axis=0)

    # one-hot x[row, target] term (the only remaining per-element compare+select)
    xt = jnp.where(col == t, xm, jnp.float32(0.0))
    part = (smooth_val - confidence) * row_block_sum(xt)            # (8, Vp)
    if smooth_val != 0.0:
        part = part - smooth_val * row_block_sum(xm)

    # Fold (8, Vp) -> (8, 128) with aligned static lane-chunk adds (vreg adds only).
    acc = part[:, 0:128]
    for c in range(1, vp // 128):
        acc = acc + part[:, c * 128:(c + 1) * 128]

    # Tiny scalar corrections (O(TM) work): entropy per valid row, and the
    # padding_idx column that the smooth term must exclude.
    n_valid = jnp.sum(row_valid.astype(jnp.float32))
    corr = jnp.float32(entropy_per_row) * n_valid
    if smooth_val != 0.0:
        xp = x[:, padding_idx:padding_idx + 1].astype(jnp.float32)  # (TM, 1)
        corr = corr + jnp.float32(smooth_val) * jnp.sum(
            jnp.where(row_valid, xp, jnp.float32(0.0)))

    sub = lax.broadcasted_iota(jnp.int32, (8, 128), 0)
    lane = lax.broadcasted_iota(jnp.int32, (8, 128), 1)
    o_ref[0] = acc + jnp.where((sub == 0) & (lane == 0), corr, jnp.float32(0.0))


def _vmem_limit_bytes():
    """Generation-aware scoped-VMEM limit (v5e/v6e: 128 MiB parts, v7x: 64 MiB/TC)."""
    cap = None
    try:
        info = pltpu.get_tpu_info()
        cap = getattr(info, "vmem_capacity_bytes", None)
    except Exception:
        cap = None
    if cap is None:
        return 48 * 1024 * 1024
    if cap >= 100 * 1024 * 1024:      # 128 MiB parts (v5e / v6e)
        return 64 * 1024 * 1024
    return 44 * 1024 * 1024           # 64 MiB per-TC parts (v7x)


def _auto_row_tile(n_rows, v_pad, in_itemsize, vmem_limit):
    # Per tile-row VMEM footprint: double-buffered input stream plus ~3 f32
    # full-tile temporaries (cast / masked / one-hot intermediates).
    per_row = v_pad * (2 * in_itemsize + 3 * 4)
    rows = int(0.7 * vmem_limit) // max(per_row, 1)
    # The raw input buffer itself needs no more than ~12 MiB to amortize the
    # ~0.35 us per-grid-step overhead, even at v7x HBM rates.
    rows = min(rows, (12 * 1024 * 1024) // max(v_pad * in_itemsize, 1))
    rows = max(8, min(int(rows), 16384))
    rows = (rows // 8) * 8
    rows = min(rows, _round_up(n_rows, 8))
    return max(rows, 8)


def label_smoothing_loss(x, target, *, size, padding_idx=0, smoothing=0.0,
                         row_tile=None):
    """Pallas implementation of LabelSmoothing.forward(x, target) -> scalar."""
    assert x.ndim == 2 and x.shape[1] == size
    N, V = x.shape

    confidence = 1.0 - smoothing
    if smoothing != 0.0 and size <= 2:
        raise ValueError("label smoothing with size <= 2 divides by zero "
                         "(mirrors the PyTorch module's smoothing/(size-2)).")
    smooth_val = smoothing / (size - 2) if smoothing != 0.0 else 0.0
    # sum_y y*log(y) for one valid row, with the KLDivLoss 0*log0 := 0 rule.
    entropy_per_row = 0.0
    if confidence > 0.0:
        entropy_per_row += confidence * math.log(confidence)
    if smooth_val > 0.0:
        entropy_per_row += (size - 2) * smooth_val * math.log(smooth_val)

    # Keep bf16 inputs bf16 (halves HBM traffic); anything else goes to f32.
    if x.dtype not in (jnp.bfloat16, jnp.float32):
        x = x.astype(jnp.float32)

    # Lane-dense block width; x itself is NOT padded (garbage lanes masked in-kernel).
    v_pad = _round_up(V, 128)

    vmem_limit = _vmem_limit_bytes()
    if row_tile is None:
        row_tile = _auto_row_tile(N, v_pad, jnp.dtype(x.dtype).itemsize, vmem_limit)
    row_tile = max(8, _round_up(int(row_tile), 8))

    # Ensure at least 2 independent tiles so the 'parallel' grid axis can shard
    # across both TensorCores on v7x (negligible cost on single-TC parts).
    half = _round_up((N + 1) // 2, 8)
    if row_tile > half:
        row_tile = max(8, half)

    num_tiles = pl.cdiv(N, row_tile)
    padded_rows = num_tiles * row_tile

    # Pad the (tiny) target vector with padding_idx so ragged-tail rows are
    # masked exactly like padding rows; x is never row- or lane-padded.
    t = target.astype(jnp.int32).reshape(-1)
    if padded_rows != N:
        t = jnp.concatenate(
            [t, jnp.full((padded_rows - N,), padding_idx, jnp.int32)])
    t2d = t.reshape(padded_rows, 1)

    kernel = functools.partial(
        _label_smoothing_kernel,
        padding_idx=padding_idx, confidence=confidence,
        smooth_val=smooth_val, entropy_per_row=entropy_per_row, valid_cols=V)

    partials = pl.pallas_call(
        kernel,
        out_shape=jax.ShapeDtypeStruct((num_tiles, 8, 128), jnp.float32),
        grid_spec=pltpu.PrefetchScalarGridSpec(
            num_scalar_prefetch=0,
            grid=(num_tiles,),
            in_specs=[
                pl.BlockSpec((row_tile, v_pad), lambda i: (i, 0)),
                pl.BlockSpec((row_tile, 1), lambda i: (i, 0)),
            ],
            out_specs=pl.BlockSpec((1, 8, 128), lambda i: (i, 0, 0)),
        ),
        compiler_params=pltpu.CompilerParams(
            dimension_semantics=("parallel",),   # independent tiles -> both TCs on v7x
            vmem_limit_bytes=vmem_limit),
    )(x, t2d)

    # Kernel now writes genuine (8,128) partials -> sum everything.
    return jnp.sum(partials)


def _reference(x, target, *, size, padding_idx, smoothing):
    """Pure-JAX reference mirroring the PyTorch module, for a sanity check."""
    confidence = 1.0 - smoothing
    N, V = x.shape
    fill = smoothing / (size - 2) if smoothing != 0.0 else 0.0
    col = jnp.arange(V)[None, :]
    t = target[:, None]
    td = jnp.full((N, V), fill, dtype=jnp.float32)
    td = jnp.where(col == t, confidence, td)
    td = td.at[:, padding_idx].set(0.0)
    td = jnp.where(t == padding_idx, 0.0, td)
    pos = td > 0
    return jnp.sum(jnp.where(pos, td * (jnp.log(jnp.where(pos, td, 1.0)) - x), 0.0))


if __name__ == "__main__":
    SIZE = 32          # number of classes (x.size(1)); lane-masked to 128 inside
    N = 56             # rows (batch*seq); deliberately NOT a multiple of the tile
    PADDING_IDX = 0
    SMOOTHING = 0.1

    key = jax.random.PRNGKey(0)
    kx, kt = jax.random.split(key)
    logits = jax.random.normal(kx, (N, SIZE), dtype=jnp.float32)
    x = jax.nn.log_softmax(logits, axis=-1)          # KLDivLoss expects log-probs
    target = jax.random.randint(kt, (N,), 0, SIZE, dtype=jnp.int32)
    target = target.at[3].set(PADDING_IDX)           # exercise the padding-row path

    ref = _reference(x, target, size=SIZE, padding_idx=PADDING_IDX,
                     smoothing=SMOOTHING)

    # Multi-tile grid with a ragged tail (56 = 3*16 + 8 valid rows in the last tile).
    loss = label_smoothing_loss(x, target, size=SIZE, padding_idx=PADDING_IDX,
                                smoothing=SMOOTHING, row_tile=16)
    loss = jax.block_until_ready(loss)
    assert jnp.allclose(loss, ref, rtol=1e-4, atol=1e-4), (loss, ref)

    # Auto-sized tile path (2 tiles after the dual-TensorCore clamp).
    loss2 = label_smoothing_loss(x, target, size=SIZE, padding_idx=PADDING_IDX,
                                 smoothing=SMOOTHING)
    loss2 = jax.block_until_ready(loss2)
    assert jnp.allclose(loss2, ref, rtol=1e-4, atol=1e-4), (loss2, ref)

    # No-smoothing specialization (skips the bulk-sum / padding-column terms).
    ref0 = _reference(x, target, size=SIZE, padding_idx=PADDING_IDX, smoothing=0.0)
    loss3 = label_smoothing_loss(x, target, size=SIZE, padding_idx=PADDING_IDX,
                                 smoothing=0.0)
    loss3 = jax.block_until_ready(loss3)
    assert jnp.allclose(loss3, ref0, rtol=1e-4, atol=1e-4), (loss3, ref0)

    print("KERNEL_OK")
</pallas_src>

<mosaic_0001>
module attributes {stable_mosaic.version = 11 : i64} {
  func.func @_label_smoothing_kernel(%arg0: i32, %arg1: memref<16x128xf32, #tpu.memory_space<vmem>>, %arg2: memref<16x1xi32, #tpu.memory_space<vmem>>, %arg3: memref<1x8x128xf32, #tpu.memory_space<vmem>>) attributes {dimension_semantics = [#tpu.dimension_semantics<parallel>], iteration_bounds = array<i64: 4>, scalar_prefetch = 0 : i64, scratch_operands = 0 : i64, tpu.core_type = #tpu.core_type<tc>, window_params = [{transform_indices = @transform_0, window_bounds = array<i64: 16, 128>}, {transform_indices = @transform_1, window_bounds = array<i64: 16, 1>}, {transform_indices = @transform_2, window_bounds = array<i64: 1, 8, 128>}]} {
    %c0 = arith.constant 0 : index
    %c0_0 = arith.constant 0 : index
    %0 = vector.load %arg1[%c0, %c0_0] : memref<16x128xf32, #tpu.memory_space<vmem>>, vector<16x128xf32>
    %c0_1 = arith.constant 0 : index
    %c0_2 = arith.constant 0 : index
    %1 = vector.load %arg2[%c0_1, %c0_2] : memref<16x1xi32, #tpu.memory_space<vmem>>, vector<16x1xi32>
    %c0_i32 = arith.constant 0 : i32
    %2 = vector.broadcast %c0_i32 : i32 to vector<16x1xi32>
    %3 = arith.cmpi ne, %1, %2 : vector<16x1xi32>
    %4 = tpu.iota {dimensions = array<i32: 1>} : vector<16x128xi32>
    %c32_i32 = arith.constant 32 : i32
    %5 = vector.broadcast %c32_i32 : i32 to vector<16x128xi32>
    %6 = arith.cmpi slt, %4, %5 : vector<16x128xi32>
    %7 = vector.broadcast %3 : vector<16x1xi1> to vector<16x128xi1>
    %8 = arith.andi %7, %6 : vector<16x128xi1>
    %cst = arith.constant 0.000000e+00 : f32
    %9 = vector.broadcast %cst : f32 to vector<16x128xf32>
    %10 = arith.select %8, %0, %9 : vector<16x128xi1>, vector<16x128xf32>
    %11 = vector.broadcast %1 : vector<16x1xi32> to vector<16x128xi32>
    %12 = arith.cmpi eq, %4, %11 : vector<16x128xi32>
    %cst_3 = arith.constant 0.000000e+00 : f32
    %13 = vector.broadcast %cst_3 : f32 to vector<16x128xf32>
    %14 = arith.select %12, %10, %13 : vector<16x128xi1>, vector<16x128xf32>
    %15 = vector.shape_cast %14 : vector<16x128xf32> to vector<2x8x128xf32>
    %cst_4 = arith.constant dense<0.000000e+00> : vector<8x128xf32>
    %16 = vector.multi_reduction <add>, %15, %cst_4 [0] : vector<2x8x128xf32> to vector<8x128xf32>
    %cst_5 = arith.constant -0.896666646 : f32
    %17 = vector.broadcast %cst_5 : f32 to vector<8x128xf32>
    %18 = arith.mulf %17, %16 : vector<8x128xf32>
    %19 = vector.shape_cast %10 : vector<16x128xf32> to vector<2x8x128xf32>
    %cst_6 = arith.constant dense<0.000000e+00> : vector<8x128xf32>
    %20 = vector.multi_reduction <add>, %19, %cst_6 [0] : vector<2x8x128xf32> to vector<8x128xf32>
    %cst_7 = arith.constant 0.00333333341 : f32
    %21 = vector.broadcast %cst_7 : f32 to vector<8x128xf32>
    %22 = arith.mulf %21, %20 : vector<8x128xf32>
    %23 = arith.subf %18, %22 : vector<8x128xf32>
    %24 = arith.extui %3 : vector<16x1xi1> to vector<16x1xi32>
    %25 = arith.sitofp %24 : vector<16x1xi32> to vector<16x1xf32>
    %26 = vector.shape_cast %25 : vector<16x1xf32> to vector<1x16x1xf32>
    %cst_8 = arith.constant dense<0.000000e+00> : vector<1xf32>
    %27 = vector.multi_reduction <add>, %26, %cst_8 [1, 2] : vector<1x16x1xf32> to vector<1xf32>
    %28 = vector.shape_cast %27 : vector<1xf32> to vector<1x1x1xf32>
    %29 = vector.extract %28[0, 0, 0] : f32 from vector<1x1x1xf32>
    %cst_9 = arith.constant -0.665202737 : f32
    %30 = arith.mulf %cst_9, %29 : f32
    %31 = vector.extract_strided_slice %0 {offsets = [0, 0], sizes = [16, 1], strides = [1, 1]} : vector<16x128xf32> to vector<16x1xf32>
    %cst_10 = arith.constant 0.000000e+00 : f32
    %32 = vector.broadcast %cst_10 : f32 to vector<16x1xf32>
    %33 = arith.select %3, %31, %32 : vector<16x1xi1>, vector<16x1xf32>
    %34 = vector.shape_cast %33 : vector<16x1xf32> to vector<1x16x1xf32>
    %cst_11 = arith.constant dense<0.000000e+00> : vector<1xf32>
    %35 = vector.multi_reduction <add>, %34, %cst_11 [1, 2] : vector<1x16x1xf32> to vector<1xf32>
    %36 = vector.shape_cast %35 : vector<1xf32> to vector<1x1x1xf32>
    %37 = vector.extract %36[0, 0, 0] : f32 from vector<1x1x1xf32>
    %cst_12 = arith.constant 0.00333333341 : f32
    %38 = arith.mulf %cst_12, %37 : f32
    %39 = arith.addf %30, %38 : f32
    %40 = tpu.iota {dimensions = array<i32: 0>} : vector<8x128xi32>
    %41 = tpu.iota {dimensions = array<i32: 1>} : vector<8x128xi32>
    %c0_i32_13 = arith.constant 0 : i32
    %42 = vector.broadcast %c0_i32_13 : i32 to vector<8x128xi32>
    %43 = arith.cmpi eq, %40, %42 : vector<8x128xi32>
    %c0_i32_14 = arith.constant 0 : i32
    %44 = vector.broadcast %c0_i32_14 : i32 to vector<8x128xi32>
    %45 = arith.cmpi eq, %41, %44 : vector<8x128xi32>
    %46 = arith.andi %43, %45 : vector<8x128xi1>
    %cst_15 = arith.constant 0.000000e+00 : f32
    %47 = vector.broadcast %39 : f32 to vector<8x128xf32>
    %48 = vector.broadcast %cst_15 : f32 to vector<8x128xf32>
    %49 = arith.select %46, %47, %48 : vector<8x128xi1>, vector<8x128xf32>
    %50 = arith.addf %23, %49 : vector<8x128xf32>
    %c0_16 = arith.constant 0 : index
    %c0_17 = arith.constant 0 : index
    %c0_18 = arith.constant 0 : index
    %51 = vector.load %arg3[%c0_16, %c0_17, %c0_18] : memref<1x8x128xf32, #tpu.memory_space<vmem>>, vector<1x8x128xf32>
    %52 = vector.shape_cast %51 : vector<1x8x128xf32> to vector<8x128xf32>
    %53 = vector.shape_cast %50 : vector<8x128xf32> to vector<1x8x128xf32>
    tpu.vector_store %arg3[%c0_16, %c0_17, %c0_18], %53 {strides = array<i32>} : memref<1x8x128xf32, #tpu.memory_space<vmem>>, vector<1x8x128xf32>,
    return
  }
  func.func @transform_0(%arg0: i32) -> (i32, i32) {
    %c0_i32 = arith.constant 0 : i32
    %c0_i32_0 = arith.constant 0 : i32
    return %arg0, %c0_i32 : i32, i32
  }
  func.func @transform_1(%arg0: i32) -> (i32, i32) {
    %c0_i32 = arith.constant 0 : i32
    %c0_i32_0 = arith.constant 0 : i32
    return %arg0, %c0_i32 : i32, i32
  }
  func.func @transform_2(%arg0: i32) -> (i32, i32, i32) {
    %c0_i32 = arith.constant 0 : i32
    %c0_i32_0 = arith.constant 0 : i32
    %c0_i32_1 = arith.constant 0 : i32
    return %arg0, %c0_i32, %c0_i32_0 : i32, i32, i32
  }
}

</mosaic_0001>

<bundles_post_ra>
// kernel: tpu_custom_call.1
= control target key start
LH: loop header
LB: loop body
LE: loop exit
PB: predicated region body
PF: predicated region fallthrough
CT: control target
= control target key end

     0   :  { %7 = vsyncpa [#allocation3], 0  ;;  %s599_s0 = inlined_call_operand.vmem [shape: f32[56,32], index: 0, kind: input, shape index: {}]   ;;  %s600_s1 = inlined_call_operand.vmem [shape: s32[64,1], index: 1, kind: input, shape index: {}]   ;;  %s601_s2 = inlined_call_operand.hbm [shape: f32[4,8,128], index: 2, kind: output, shape index: {}]  }
   0x1   :  { %9 = vsyncpa [#allocation3 + $0x1], 0  ;;  %s494_s9 = smov 0   ;;  %s496_s10 = smov 0  }
   0x2   :  { %s498_s11 = smov 0   ;;  %s500_s12 = smov 0  }
   0x3 LB: > { %s515_s13 = sadd.s32 4294967295, %s474_s12   ;;  %s350_s14 = sadd.s32 4294967294, %s474_s12   ;;  %s474_s12 = sphi %s500_s12, %s607_s12   ;;  %s470_s11 = sphi %s498_s11, %s606_s11   ;;  %s466_s10 = sphi %s496_s10, %s605_s10   ;;  %s462_s9 = sphi %s494_s9, %s604_s9  }
   0x4   : > { %s519_s15 = sadd.s32 1, %s474_s12   ;;  %s74_s16 = sadd.s32 1, %s470_s11 }
   0x5   : > { %s71_s17 = ssub.s32 %s474_s12, %s519_s15  ;;  %p84_p0 = scmp.ne.s32.totalorder %s470_s11, %s466_s10 }
   0x6   : > { %p72_p1 = scmp.eq.s32.totalorder %s71_s17, 0  ;;  %p85_p2 = scmp.eq.s32.totalorder %s515_s13, 3 }
   0x7   : > { %p90_p3 = scmp.ne.s32.totalorder %s466_s10, %s462_s9  ;;  %p91_p4 = scmp.eq.s32.totalorder %s350_s14, 3 }
   0x8   : > { %s530_s18 = scalar_select %p72_p1, %s470_s11, %s74_s16  }
   0x9   : > { %p532_p5 = por %p85_p2, %p84_p0  ;;  %p536_p6 = por %p91_p4, %p90_p3 }
   0xa   : > { %p353_p7 = scmp.ge.s32.totalorder %s474_s12, 1  ;;  %p135_p8 = scmp.lt.s32.totalorder %s474_s12, 5 }
   0xc   : > { %p136_p9 = pnand %p353_p7, %p135_p8 }
   0xd   : > { %s355_s21 = sshll.u32 (!%p136_p9), %s515_s13, 1  ;;  %v476_v0 = vmov (!%p136_p9), 0   ;;  %vm226_vm0 = vcmask (!%p136_p9), 7168   ;;  %v477_v5 = vmov (!%p136_p9), 0.0   ;;  %v192_v32 = vlaneseq (!%p136_p9)  ;;  %s163_s3 = sand.u32 (!%p136_p9), 1, %s466_s10  }
   0xe   : > { %139 = sbr.rel (%p136_p9) target bundleno = 261 (0x105), region = 28  ;;  %p181_p10 = scmp.lt.s32.totalorder (!%p136_p9), %s355_s21, 7  ;;  %410 = vset.pattern.permute.xlu1 (!%p136_p9), %v476_v0  ;;  %411 = vset.pattern.permute.xlu0 (!%p136_p9), %v476_v0 }
   0xf   : > { %p171_p11 = scmp.lt.s32.totalorder (!%p136_p9), %s355_s21, 6  ;;  %v193_v34 = vand.u32 (!%p136_p9), 127, %v192_v32  ;;  %v257_v42 = vshrl.u32 (!%p136_p9), %v192_v32, 7  ;;  %s354_s4 = sshll.u32 (!%p136_p9), %s163_s3, 3 }
  0x10   : > { %s362_s16 = sshll.u32 (!%p136_p9), %s515_s13, 7  ;;  %s165_s17 = scalar_lea.vmem (!%p136_p9), [#allocation2], %s354_s4 }
  0x11   : > { %vm194_vm3 = vcmp.lt.s32.totalorder (!%p136_p9), %v193_v34, 32  ;;  %vm258_vm10 = vcmp.eq.s32.totalorder (!%p136_p9), %v257_v42, 0  ;;  %vm259_vm11 = vcmp.eq.s32.totalorder (!%p136_p9), %v193_v34, 0  ;;  %s557_s24 = scalar_lea.hbm (!%p136_p9), %s601_s2, %s362_s16  ;;  %s266_s25 = scalar_lea.sflag (!%p136_p9), [#allocation3], %s163_s3 }
  0x12   : > { %vm260_vm12 = vmand (!%p136_p9), %vm258_vm10, %vm259_vm11  ;;  %s478_s13 = smov (!%p136_p9), [#allocation2]  }
  0x15   : > { %s182_s22 = scalar_select %p181_p10, %s355_s21, 7 }
  0x16   : > { %s609_s21 = smov (!%p171_p11, %s355_s21), 6 }
  0x17   : > { %s358_s23 = sshll.u32 %s182_s22, 3  ;;  %s356_s27 = sshll.u32 %s609_s21, 3 }
  0x18   : > { %s184_s26 = scalar_lea.vmem %s600_s1, %s358_s23  ;;  %s174_s30 = scalar_lea.vmem %s599_s0, %s356_s27 }
  0x19   : > { %v188_v1 = vld [vmem:[%s184_s26] sm:$0xff]  ;;  %v189_v2 = vld [vmem:[%s184_s26 + $0x8] sm:$0xff]  ;;  %s279_s21 = sshll.u32 %s165_s17, 4  ;;  %s416_s27 = sshll.u32 %s478_s13, 4  ;;  %s559_s21 = int_to_ptr.vmem [resolvable:$true] %s279_s21  ;;  %s417_s27 = int_to_ptr.vmem [resolvable:$false] %s416_s27 }
  0x1a   : > { %vm190_vm1 = vcmp.ne.s32.totalorder %v188_v1, 0  ;;  %vm191_vm2 = vcmp.ne.s32.totalorder %v189_v2, 0  ;;  %v186_v3 = vld [vmem:[%s174_s30] sm:$0xff]  ;;  %v187_v4 = vld [vmem:[%s174_s30 + $0x8] sm:$0xff]  ;;  %s412_s26 = scalar_lea.vmem %s559_s21, 128  ;;  %s418_s28 = scalar_lea.vmem %s417_s27, 256 }
  0x1b   : > { %v359_v6 = vsel %vm190_vm1, 1.0, %v477_v5  ;;  %v360_v7 = vsel %vm191_vm2, 1.0, %v477_v5  ;;  %v240_v8 = vsel %vm190_vm1, %v186_v3, 0.0  ;;  %v241_v9 = vsel %vm191_vm2, %v187_v4, 0.0  ;;  %p413_p12 = scmp.ne.s32.totalorder %s559_s21, %s412_s26  ;;  %p419_p1 = scmp.lt.s32.totalorder %s559_s21, %s417_s27 }
  0x1c   : > { %v227_v10 = vsel %vm226_vm0, %v359_v6, 0.0  ;;  %v228_v11 = vsel %vm226_vm0, %v360_v7, 0.0  ;;  %v242_v12 = vsel %vm226_vm0, %v240_v8, 0.0  ;;  %v243_v13 = vsel %vm226_vm0, %v241_v9, 0.0  ;;  %p420_p2 = scmp.lt.s32.totalorder %s418_s28, %s412_s26 }
  0x1d   : > { %v229_v14 = vadd.f32 %v228_v11, %v227_v10  ;;  %v195_v15 = vsel %vm190_vm1, 1, %v476_v0  ;;  %v244_v16 = vadd.f32 %v243_v13, %v242_v12  ;;  %v196_v17 = vsel %vm191_vm2, 1, %v476_v0  ;;  %p414_p13 = pnand %p413_p12, %p532_p5 }
  0x1e   : > { %198 = vperm.xlu1 %410, %v195_v15   ;;  %p421_p3 = por %p420_p2, %p419_p1 }
  0x1f   : > { %230 = vadd.xlane.f32.xlu0 %v229_v14  ;;  %p415_p0 = pneg %p414_p13 }
  0x21   : > { %p422_p4 = pnand %p421_p3, %p415_p0 }
  0x22   : > { %201 = vperm.xlu1 %410, %v196_v17  }
  0x23   : > { %245 = vadd.xlane.f32.xlu0 %v244_v16 }
  0x26   : > { %213 = vperm.xlu1 %410, %v189_v2  }
  0x39   : > { %210 = vperm.xlu0 %411, %v188_v1  }
  0x9d   : > { %v199_v33 = vpop.permute.xlu1 %198 }
  0x9e   : > { %vm203_vm4 = vcmp.eq.s32.totalorder %v199_v33, 1 }
  0x9f   : > { %vm205_vm6 = vmand %vm203_vm4, %vm194_vm3 }
  0xa0   : > { %v207_v39 = vsel %vm205_vm6, %v186_v3, 0.0 }
  0xa1   : > { %v202_v35 = vpop.permute.xlu1 %201 }
  0xa2   : > { %vm204_vm5 = vcmp.eq.s32.totalorder %v202_v35, 1 }
  0xa3   : > { %vm206_vm7 = vmand %vm204_vm5, %vm194_vm3 }
  0xa4   : > { %v208_v38 = vsel %vm206_vm7, %v187_v4, 0.0 }
  0xa5   : > { %v214_v36 = vpop.permute.xlu1 %213  ;;  %v221_v44 = vadd.f32 %v208_v38, %v207_v39 }
  0xa6   : > { %vm216_vm8 = vcmp.eq.s32.totalorder %v193_v34, %v214_v36 }
  0xa7   : > { %v218_v40 = vsel %vm216_vm8, %v208_v38, 0.0  ;;  %v222_v46 = vmul.f32 0.0033333334, %v221_v44 }
  0xac   : > { %v231_v18 = vpop.xlane.xlu0 %230 }
  0xad   : > { %v232_v19 = vrot.slane %v231_v18, 4 }
  0xaf   : > { %v233_v20 = vadd.f32 %v232_v19, %v231_v18 }
  0xb0   : > { %v246_v21 = vpop.xlane.xlu0 %245 }
  0xb1   : > { %v234_v22 = vrot.slane %v233_v20, 2  ;;  %v247_v23 = vrot.slane %v246_v21, 4 }
  0xb3   : > { %v248_v24 = vadd.f32 %v247_v23, %v246_v21  ;;  %v235_v25 = vadd.f32 %v234_v22, %v233_v20 }
  0xb5   : > { %v249_v26 = vrot.slane %v248_v24, 2  ;;  %v236_v27 = vrot.slane %v235_v25, 1 }
  0xb7   : > { %v237_v28 = vadd.f32 %v236_v27, %v235_v25  ;;  %v250_v29 = vadd.f32 %v249_v26, %v248_v24 }
  0xb8   : > { %v211_v37 = vpop.permute.xlu0 %210 }
  0xb9   : > { %365 = vpush %v237_v28  ;;  %v251_v30 = vrot.slane %v250_v29, 1  ;;  %vm215_vm9 = vcmp.eq.s32.totalorder %v193_v34, %v211_v37 }
  0xba   : > { %v217_v41 = vsel %vm215_vm9, %v207_v39, 0.0 }
  0xbb   : > { %v252_v31 = vadd.f32 %v251_v30, %v250_v29  ;;  %v219_v43 = vadd.f32 %v218_v40, %v217_v41 }
  0xbd   : > { %367 = vpush %v252_v31  ;;  %v220_v45 = vmul.f32 -0.89666665, %v219_v43 }
  0xbf   : > { %v223_v47 = vsub.f32 %v220_v45, %v222_v46 }
  0xea   : > { %s366_s5 = spop %365 }
  0xeb   : > { %s239_s6 = smul.f32 -0.66520274, %s366_s5 }
  0xee   : > { %s368_s7 = spop %367 }
  0xef   : > { %s254_s8 = smul.f32 0.0033333334, %s368_s7 }
  0xf1   : > { %s255_s14 = sadd.f32 %s254_s8, %s239_s6 }
  0xf3   : > { %v261_v48 = vstv %s255_s14 }
  0xf4   : > { %v262_v49 = vsel %vm260_vm12, %v261_v48, 0.0 }
  0xf5   : > { %v263_v50 = vadd.f32 %v262_v49, %v223_v47 }
  0xf7   : > { %264 = vst [vmem:[%s165_s17] sm:$0xff] %v263_v50 }
  0xf8   : > { %425 = shalt.err (!%p422_p4)
}
  0xf9   : > { %s426_s29 = scalar_lea.hbm %s557_s24, 128  ;;  %s430_s4 = scalar_lea.hbm %s601_s2, 512 }
  0xfa   : > { %p427_p7 = scmp.ne.s32.totalorder %s557_s24, %s426_s29  ;;  %p431_p10 = scmp.lt.u32.totalorder %s557_s24, %s601_s2 }
  0xfb   : > { %p432_p11 = scmp.lt.u32.totalorder %s430_s4, %s426_s29  ;;  %p434_p13 = scmp.lt.u32.totalorder %s426_s29, %s557_s24 }
  0xfc   : > { %p428_p8 = pnand %p427_p7, %p532_p5 }
  0xfd   : > { %p433_p12 = por %p432_p11, %p431_p10 }
  0xfe   : > { %p429_p9 = pneg %p428_p8 }
  0xff   : > { %p435_p0 = por %p434_p13, %p433_p12 }
 0x101   : > { %p436_p1 = pnand %p435_p0, %p429_p9 }
 0x103   : > { %439 = shalt.err (!%p436_p1)
}
 0x104   : > { %369 = dma.vmem_to_hbm [thread:$0]  (%p532_p5), %s559_s21, 128, %s557_s24, %s266_s25  }
 0x105 PF: > { %p375_p2 = scmp.ge.s32.totalorder %s474_s12, 2  ;;  %s291_s7 = sand.u32 1, %s462_s9  }
 0x106   : > { %s292_s8 = scalar_lea.sflag [#allocation3], %s291_s7 }
 0x107   : > { %p372_p3 = pnand %p375_p2, %p536_p6 }
 0x109   : > { %457 = dma.done.wait (!%p372_p3), %s292_s8, 128  }
 0x10a   : > { %459 = vsyncadd (!%p372_p3), %s292_s8, 4294967168  ;;  %p12_p4 = scmp.ge.s32.totalorder %s519_s15, 6   ;;  %s604_s9 = smov %s466_s10 }
 0x10b   : > { %s605_s10 = smov %s470_s11  ;;  %s606_s11 = smov %s530_s18 }
 0x10c   : > { %s607_s12 = smov %s519_s15  ;;  %14 = sbr.rel (!%p12_p4) target bundleno = 3 (0x3), region = 66 }
 0x113   :  { %297 = vsyncpa [#allocation3], 1 }
 0x114   :  { %299 = vsyncpa [#allocation3 + $0x1], 1 }

</bundles_post_ra>
